<compile_context>
chip_gen: v5e
topology: v5e:2x2
jax: 0.10.0
libtpu: 0.0.40
codegen_flags: <defaults>
</compile_context>

<pallas_src>
import functools

import jax
import jax.numpy as jnp
from jax.experimental import pallas as pl
from jax.experimental.pallas import tpu as pltpu


def _layernorm(x, gamma, beta, eps=1e-5):
    # Fused single-pass LayerNorm: var = E[x^2] - mu^2 (one reduction sweep).
    mu = jnp.mean(x, axis=-1, keepdims=True)
    mu2 = jnp.mean(x * x, axis=-1, keepdims=True)
    var = jnp.maximum(mu2 - mu * mu, 0.0)
    return (x - mu) * jax.lax.rsqrt(var + eps) * gamma + beta


def encoder_kernel(
    seq_ref,            # (1, S, E)   f32 activations of one batch element
    mask_ref,           # (1, 1, S)   f32 key mask (1 = keep, 0 = mask)
    wqkv_ref, bqkv_ref,  # (E, 3E), (1, 3E)  fused QKV (head-major column blocks)
    wo_ref, bo_ref,      # (H, Dh, E), (1, E)
    g1_ref, be1_ref,     # (1, E) LayerNorm 1
    w1_ref, b1_ref,      # (E, F), (1, F)
    w2_ref, b2_ref,      # (F, E), (1, E)
    g2_ref, be2_ref,     # (1, E) LayerNorm 2
    o_ref,               # (1, S, E)
    *, num_heads, matmul_dtype,
):
    _, S, E = seq_ref.shape
    H = num_heads
    Dh = E // H
    cdt = matmul_dtype

    x2 = seq_ref[...].reshape(S, E)                 # (S, E) f32
    x_c = x2.astype(cdt)

    # Additive key mask; same predicate as the reference (`mask == 0`).
    mask = mask_ref[...]                            # (1, 1, S)
    mask_bias = jnp.where(mask == 0.0, jnp.float32(-1e10), jnp.float32(0.0))

    # ---- fused QKV projection: one lane-dense (S,E)@(E,3E) matmul ----------
    # (1/sqrt(Dh) already folded into the q columns / bias on the host)
    qkv = jnp.dot(x_c, wqkv_ref[...].astype(cdt),
                  preferred_element_type=jnp.float32) + bqkv_ref[...]  # (S, 3E)

    # ---- head split: per-head column blocks -> leading head axis -----------
    qkv_h = jnp.stack(
        [qkv[:, h * 3 * Dh:(h + 1) * 3 * Dh] for h in range(H)], axis=0)  # (H,S,3Dh)
    q = qkv_h[..., :Dh]                             # (H, S, Dh), already scaled
    k = qkv_h[..., Dh:2 * Dh]
    v = qkv_h[..., 2 * Dh:]

    # ---- head-batched attention (leading batch dim = heads) ----------------
    energy = jnp.einsum('hqd,hkd->hqk', q.astype(cdt), k.astype(cdt),
                        preferred_element_type=jnp.float32) + mask_bias  # (H,S,S)
    m_ = jnp.max(energy, axis=-1, keepdims=True)
    e_ = jnp.exp(energy - m_)
    attn = e_ / jnp.sum(e_, axis=-1, keepdims=True)         # exact softmax
    ctx = jnp.einsum('hqk,hkd->hqd', attn.astype(cdt), v.astype(cdt),
                     preferred_element_type=jnp.float32)    # (H, S, Dh)

    # ---- output projection: head reduction folded into the f32 accumulator -
    wo_c = wo_ref[...].astype(cdt)
    attn_out = jnp.dot(ctx[0].astype(cdt), wo_c[0],
                       preferred_element_type=jnp.float32)
    for h in range(1, H):
        attn_out = attn_out + jnp.dot(ctx[h].astype(cdt), wo_c[h],
                                      preferred_element_type=jnp.float32)
    attn_out = attn_out + bo_ref[...]                        # (S, E)

    # dropout / drop_path1 are identity (eval, p = 0)
    x1 = _layernorm(attn_out + x2, g1_ref[...], be1_ref[...])

    # ---- feed-forward -------------------------------------------------------
    h_mid = jnp.dot(x1.astype(cdt), w1_ref[...].astype(cdt),
                    preferred_element_type=jnp.float32) + b1_ref[...]
    h_mid = jnp.maximum(h_mid, 0.0)                          # ReLU
    ffn = jnp.dot(h_mid.astype(cdt), w2_ref[...].astype(cdt),
                  preferred_element_type=jnp.float32) + b2_ref[...]

    # dropout / drop_path2 are identity
    x_out = _layernorm(ffn + x1, g2_ref[...], be2_ref[...])
    o_ref[...] = x_out.reshape(1, S, E).astype(o_ref.dtype)


def _vmem_limit_bytes():
    """Generation-aware VMEM budget: <=75% of physical per-core VMEM.

    v7x has 64 MiB per TensorCore (never request all of it); v5e/v6e have
    128 MiB, so larger resident blocks are allowed there.
    """
    try:
        cap = int(pltpu.get_tpu_info().vmem_capacity_bytes)
    except Exception:
        cap = 64 * 1024 * 1024
    return max(32 * 1024 * 1024, min((cap * 3) // 4, 96 * 1024 * 1024))


def transformer_encoder(seq, seq_mask, params, num_heads,
                        matmul_dtype=jnp.float32):
    B, S, E = seq.shape
    H = num_heads
    Dh = E // H
    F = params["w1"].shape[1]
    wdt = matmul_dtype
    scale = 1.0 / (Dh ** 0.5)

    # ---- host-side weight relayout (runs once under jit, essentially free) --
    # Fused QKV weight (E, 3E), head-major column blocks [q_h | k_h | v_h],
    # with the attention scale folded into the q columns / bias.
    wq_h = (params["wq"] * scale).reshape(E, H, Dh)
    wk_h = params["wk"].reshape(E, H, Dh)
    wv_h = params["wv"].reshape(E, H, Dh)
    wqkv = jnp.concatenate([wq_h, wk_h, wv_h], axis=-1).reshape(E, 3 * E)
    bq_h = (params["bq"] * scale).reshape(H, Dh)
    bqkv = jnp.concatenate([bq_h, params["bk"].reshape(H, Dh),
                            params["bv"].reshape(H, Dh)],
                           axis=-1).reshape(1, 3 * E)
    wo = params["wo"].reshape(H, Dh, E)

    mask3 = seq_mask.astype(jnp.float32).reshape(B, 1, S)

    weight_args = (
        wqkv.astype(wdt), bqkv,
        wo.astype(wdt), params["bo"].reshape(1, E),
        params["g1"].reshape(1, E), params["be1"].reshape(1, E),
        params["w1"].astype(wdt), params["b1"].reshape(1, F),
        params["w2"].astype(wdt), params["b2"].reshape(1, E),
        params["g2"].reshape(1, E), params["be2"].reshape(1, E),
    )

    def const_spec(a):
        zeros = (0,) * a.ndim
        return pl.BlockSpec(a.shape, lambda b, _z=zeros: _z)

    kernel = functools.partial(encoder_kernel, num_heads=H,
                               matmul_dtype=matmul_dtype)

    return pl.pallas_call(
        kernel,
        out_shape=jax.ShapeDtypeStruct((B, S, E), seq.dtype),
        grid=(B,),                                  # per-batch blocks -> pipelining
        in_specs=[pl.BlockSpec((1, S, E), lambda b: (b, 0, 0)),
                  pl.BlockSpec((1, 1, S), lambda b: (b, 0, 0))]
                 + [const_spec(w) for w in weight_args],
        out_specs=pl.BlockSpec((1, S, E), lambda b: (b, 0, 0)),
        compiler_params=pltpu.CompilerParams(
            dimension_semantics=("parallel",),       # megacore sharding on v7x
            vmem_limit_bytes=_vmem_limit_bytes()),
    )(seq, mask3, *weight_args)


# ------------------------------ pure-JAX reference ---------------------------
def reference(seq, seq_mask, params, num_heads):
    B, S, E = seq.shape
    H = num_heads
    Dh = E // H
    q = seq @ params["wq"] + params["bq"]
    k = seq @ params["wk"] + params["bk"]
    v = seq @ params["wv"] + params["bv"]
    q = q.reshape(B, S, H, Dh).transpose(0, 2, 1, 3)
    k = k.reshape(B, S, H, Dh).transpose(0, 2, 1, 3)
    v = v.reshape(B, S, H, Dh).transpose(0, 2, 1, 3)
    energy = jnp.einsum("bhqd,bhkd->bhqk", q, k) / jnp.sqrt(jnp.float32(Dh))
    m = seq_mask[:, None, None, :]
    energy = jnp.where(m == 0, -1e10, energy)
    attn = jax.nn.softmax(energy, axis=-1)
    ctx = jnp.einsum("bhqk,bhkd->bhqd", attn, v)
    ctx = ctx.transpose(0, 2, 1, 3).reshape(B, S, E)
    ctx = ctx @ params["wo"] + params["bo"]

    def ln(x, g, b, eps=1e-5):
        mu = jnp.mean(x, -1, keepdims=True)
        var = jnp.mean((x - mu) ** 2, -1, keepdims=True)
        return (x - mu) / jnp.sqrt(var + eps) * g + b

    x1 = ln(ctx + seq, params["g1"], params["be1"])
    h = jnp.maximum(x1 @ params["w1"] + params["b1"], 0.0)
    ffn = h @ params["w2"] + params["b2"]
    return ln(ffn + x1, params["g2"], params["be2"])


if __name__ == "__main__":
    B, S, E, H, F = 2, 8, 32, 4, 64

    key = jax.random.PRNGKey(0)
    keys = jax.random.split(key, 8)

    def init_w(k, shape, fan_in):
        return (jax.random.normal(k, shape, jnp.float32)
                * jnp.sqrt(2.0 / fan_in)).astype(jnp.float32)

    params = {
        "wq": init_w(keys[0], (E, E), E), "bq": jnp.zeros((E,), jnp.float32),
        "wk": init_w(keys[1], (E, E), E), "bk": jnp.zeros((E,), jnp.float32),
        "wv": init_w(keys[2], (E, E), E), "bv": jnp.zeros((E,), jnp.float32),
        "wo": init_w(keys[3], (E, E), E), "bo": jnp.zeros((E,), jnp.float32),
        "g1": jnp.ones((E,), jnp.float32), "be1": jnp.zeros((E,), jnp.float32),
        "w1": init_w(keys[4], (E, F), E), "b1": jnp.zeros((F,), jnp.float32),
        "w2": init_w(keys[5], (F, E), F), "b2": jnp.zeros((E,), jnp.float32),
        "g2": jnp.ones((E,), jnp.float32), "be2": jnp.zeros((E,), jnp.float32),
    }

    seq = jax.random.normal(keys[6], (B, S, E), jnp.float32)
    # mask out last two key positions of batch 1
    seq_mask = jnp.ones((B, S), jnp.float32).at[1, -2:].set(0.0)

    # --- f32 path: exact check against the pure-JAX reference ---------------
    out = transformer_encoder(seq, seq_mask, params, num_heads=H)
    out = jax.block_until_ready(out)
    ref = reference(seq, seq_mask, params, num_heads=H)
    assert out.shape == (B, S, E)
    assert jnp.allclose(out, ref, atol=5e-4, rtol=5e-4), (
        float(jnp.max(jnp.abs(out - ref))))

    # --- bf16 matmul path (recommended for v6e/v7x): check it runs / finite --
    out_bf16 = jax.block_until_ready(
        transformer_encoder(seq, seq_mask, params, num_heads=H,
                            matmul_dtype=jnp.bfloat16))
    assert out_bf16.shape == (B, S, E)
    assert bool(jnp.isfinite(out_bf16).all())

    print("KERNEL_OK")
</pallas_src>

<mosaic_0001>
module attributes {stable_mosaic.version = 11 : i64} {
  func.func @encoder_kernel(%arg0: i32, %arg1: memref<1x8x32xf32, #tpu.memory_space<vmem>>, %arg2: memref<1x1x8xf32, #tpu.memory_space<vmem>>, %arg3: memref<32x96xf32, #tpu.memory_space<vmem>>, %arg4: memref<1x96xf32, #tpu.memory_space<vmem>>, %arg5: memref<4x8x32xf32, #tpu.memory_space<vmem>>, %arg6: memref<1x32xf32, #tpu.memory_space<vmem>>, %arg7: memref<1x32xf32, #tpu.memory_space<vmem>>, %arg8: memref<1x32xf32, #tpu.memory_space<vmem>>, %arg9: memref<32x64xf32, #tpu.memory_space<vmem>>, %arg10: memref<1x64xf32, #tpu.memory_space<vmem>>, %arg11: memref<64x32xf32, #tpu.memory_space<vmem>>, %arg12: memref<1x32xf32, #tpu.memory_space<vmem>>, %arg13: memref<1x32xf32, #tpu.memory_space<vmem>>, %arg14: memref<1x32xf32, #tpu.memory_space<vmem>>, %arg15: memref<1x8x32xf32, #tpu.memory_space<vmem>>) attributes {dimension_semantics = [#tpu.dimension_semantics<parallel>], iteration_bounds = array<i64: 2>, scalar_prefetch = 0 : i64, scratch_operands = 0 : i64, tpu.core_type = #tpu.core_type<tc>, window_params = [{transform_indices = @transform_0, window_bounds = array<i64: 1, 8, 32>}, {transform_indices = @transform_1, window_bounds = array<i64: 1, 1, 8>}, {pipeline_mode = #tpu.pipeline_mode<synchronous>, transform_indices = @transform_2, window_bounds = array<i64: 32, 96>}, {pipeline_mode = #tpu.pipeline_mode<synchronous>, transform_indices = @transform_3, window_bounds = array<i64: 1, 96>}, {pipeline_mode = #tpu.pipeline_mode<synchronous>, transform_indices = @transform_4, window_bounds = array<i64: 4, 8, 32>}, {pipeline_mode = #tpu.pipeline_mode<synchronous>, transform_indices = @transform_5, window_bounds = array<i64: 1, 32>}, {pipeline_mode = #tpu.pipeline_mode<synchronous>, transform_indices = @transform_6, window_bounds = array<i64: 1, 32>}, {pipeline_mode = #tpu.pipeline_mode<synchronous>, transform_indices = @transform_7, window_bounds = array<i64: 1, 32>}, {pipeline_mode = #tpu.pipeline_mode<synchronous>, transform_indices = @transform_8, window_bounds = array<i64: 32, 64>}, {pipeline_mode = #tpu.pipeline_mode<synchronous>, transform_indices = @transform_9, window_bounds = array<i64: 1, 64>}, {pipeline_mode = #tpu.pipeline_mode<synchronous>, transform_indices = @transform_10, window_bounds = array<i64: 64, 32>}, {pipeline_mode = #tpu.pipeline_mode<synchronous>, transform_indices = @transform_11, window_bounds = array<i64: 1, 32>}, {pipeline_mode = #tpu.pipeline_mode<synchronous>, transform_indices = @transform_12, window_bounds = array<i64: 1, 32>}, {pipeline_mode = #tpu.pipeline_mode<synchronous>, transform_indices = @transform_13, window_bounds = array<i64: 1, 32>}, {transform_indices = @transform_14, window_bounds = array<i64: 1, 8, 32>}]} {
    %c0 = arith.constant 0 : index
    %c0_0 = arith.constant 0 : index
    %c0_1 = arith.constant 0 : index
    %0 = vector.load %arg1[%c0, %c0_0, %c0_1] : memref<1x8x32xf32, #tpu.memory_space<vmem>>, vector<1x8x32xf32>
    %1 = vector.shape_cast %0 : vector<1x8x32xf32> to vector<8x32xf32>
    %c0_2 = arith.constant 0 : index
    %c0_3 = arith.constant 0 : index
    %c0_4 = arith.constant 0 : index
    %2 = vector.load %arg2[%c0_2, %c0_3, %c0_4] : memref<1x1x8xf32, #tpu.memory_space<vmem>>, vector<1x1x8xf32>
    %cst = arith.constant 0.000000e+00 : f32
    %3 = vector.broadcast %cst : f32 to vector<1x1x8xf32>
    %4 = arith.cmpf oeq, %2, %3 : vector<1x1x8xf32>
    %cst_5 = arith.constant -1.000000e+10 : f32
    %cst_6 = arith.constant 0.000000e+00 : f32
    %5 = vector.broadcast %cst_5 : f32 to vector<1x1x8xf32>
    %6 = vector.broadcast %cst_6 : f32 to vector<1x1x8xf32>
    %7 = arith.select %4, %5, %6 : vector<1x1x8xi1>, vector<1x1x8xf32>
    %c0_7 = arith.constant 0 : index
    %c0_8 = arith.constant 0 : index
    %8 = vector.load %arg3[%c0_7, %c0_8] : memref<32x96xf32, #tpu.memory_space<vmem>>, vector<32x96xf32>
    %cst_9 = arith.constant dense<0.000000e+00> : vector<8x96xf32>
    %9 = tpu.matmul %1, %8, %cst_9 {dimension_numbers = #tpu.dot_dimension_numbers<[1], [0], [0], [1], [0, 0, 1, 1], [], []>} : vector<8x32xf32>, vector<32x96xf32>, vector<8x96xf32> -> vector<8x96xf32>
    %c0_10 = arith.constant 0 : index
    %c0_11 = arith.constant 0 : index
    %10 = vector.load %arg4[%c0_10, %c0_11] : memref<1x96xf32, #tpu.memory_space<vmem>>, vector<1x96xf32>
    %11 = vector.broadcast %10 : vector<1x96xf32> to vector<8x96xf32>
    %12 = arith.addf %9, %11 : vector<8x96xf32>
    %13 = vector.extract_strided_slice %12 {offsets = [0, 0], sizes = [8, 24], strides = [1, 1]} : vector<8x96xf32> to vector<8x24xf32>
    %14 = vector.extract_strided_slice %12 {offsets = [0, 24], sizes = [8, 24], strides = [1, 1]} : vector<8x96xf32> to vector<8x24xf32>
    %15 = vector.extract_strided_slice %12 {offsets = [0, 48], sizes = [8, 24], strides = [1, 1]} : vector<8x96xf32> to vector<8x24xf32>
    %16 = vector.extract_strided_slice %12 {offsets = [0, 72], sizes = [8, 24], strides = [1, 1]} : vector<8x96xf32> to vector<8x24xf32>
    %17 = vector.shape_cast %13 : vector<8x24xf32> to vector<1x8x24xf32>
    %18 = vector.shape_cast %14 : vector<8x24xf32> to vector<1x8x24xf32>
    %19 = vector.shape_cast %15 : vector<8x24xf32> to vector<1x8x24xf32>
    %20 = vector.shape_cast %16 : vector<8x24xf32> to vector<1x8x24xf32>
    %21 = tpu.concatenate %17, %18, %19, %20 in 0 : vector<1x8x24xf32>, vector<1x8x24xf32>, vector<1x8x24xf32>, vector<1x8x24xf32> -> vector<4x8x24xf32>
    %22 = vector.extract_strided_slice %21 {offsets = [0, 0, 0], sizes = [4, 8, 8], strides = [1, 1, 1]} : vector<4x8x24xf32> to vector<4x8x8xf32>
    %23 = vector.extract_strided_slice %21 {offsets = [0, 0, 8], sizes = [4, 8, 8], strides = [1, 1, 1]} : vector<4x8x24xf32> to vector<4x8x8xf32>
    %24 = vector.extract_strided_slice %21 {offsets = [0, 0, 16], sizes = [4, 8, 8], strides = [1, 1, 1]} : vector<4x8x24xf32> to vector<4x8x8xf32>
    "tpu.trace_start"() <{level = 10 : i32, message = "hqd,hkd->hqk"}> : () -> ()
    %cst_12 = arith.constant dense<0.000000e+00> : vector<4x8x8xf32>
    %25 = tpu.matmul %22, %23, %cst_12 {dimension_numbers = #tpu.dot_dimension_numbers<[2], [2], [1], [1], [0, 0, 0, 1, 1, 1], [0], [0]>} : vector<4x8x8xf32>, vector<4x8x8xf32>, vector<4x8x8xf32> -> vector<4x8x8xf32>
    "tpu.trace_stop"() : () -> ()
    %26 = vector.broadcast %7 : vector<1x1x8xf32> to vector<4x8x8xf32>
    %27 = arith.addf %25, %26 : vector<4x8x8xf32>
    %cst_13 = arith.constant dense<0xFF800000> : vector<4x8xf32>
    %28 = vector.multi_reduction <maximumf>, %27, %cst_13 [2] : vector<4x8x8xf32> to vector<4x8xf32>
    %29 = vector.shape_cast %28 : vector<4x8xf32> to vector<4x8x1xf32>
    %30 = vector.broadcast %29 : vector<4x8x1xf32> to vector<4x8x8xf32>
    %31 = arith.subf %27, %30 : vector<4x8x8xf32>
    %32 = math.exp %31 : vector<4x8x8xf32>
    %cst_14 = arith.constant dense<0.000000e+00> : vector<4x8xf32>
    %33 = vector.multi_reduction <add>, %32, %cst_14 [2] : vector<4x8x8xf32> to vector<4x8xf32>
    %34 = vector.shape_cast %33 : vector<4x8xf32> to vector<4x8x1xf32>
    %35 = vector.broadcast %34 : vector<4x8x1xf32> to vector<4x8x8xf32>
    %36 = arith.divf %32, %35 : vector<4x8x8xf32>
    "tpu.trace_start"() <{level = 10 : i32, message = "hqk,hkd->hqd"}> : () -> ()
    %cst_15 = arith.constant dense<0.000000e+00> : vector<4x8x8xf32>
    %37 = tpu.matmul %36, %24, %cst_15 {dimension_numbers = #tpu.dot_dimension_numbers<[2], [1], [1], [2], [0, 0, 0, 1, 1, 2], [0], [0]>} : vector<4x8x8xf32>, vector<4x8x8xf32>, vector<4x8x8xf32> -> vector<4x8x8xf32>
    "tpu.trace_stop"() : () -> ()
    %c0_16 = arith.constant 0 : index
    %c0_17 = arith.constant 0 : index
    %c0_18 = arith.constant 0 : index
    %38 = vector.load %arg5[%c0_16, %c0_17, %c0_18] : memref<4x8x32xf32, #tpu.memory_space<vmem>>, vector<4x8x32xf32>
    %39 = vector.extract_strided_slice %37 {offsets = [0, 0, 0], sizes = [1, 8, 8], strides = [1, 1, 1]} : vector<4x8x8xf32> to vector<1x8x8xf32>
    %40 = vector.shape_cast %39 : vector<1x8x8xf32> to vector<8x8xf32>
    %41 = vector.extract_strided_slice %38 {offsets = [0, 0, 0], sizes = [1, 8, 32], strides = [1, 1, 1]} : vector<4x8x32xf32> to vector<1x8x32xf32>
    %42 = vector.shape_cast %41 : vector<1x8x32xf32> to vector<8x32xf32>
    %cst_19 = arith.constant dense<0.000000e+00> : vector<8x32xf32>
    %43 = tpu.matmul %40, %42, %cst_19 {dimension_numbers = #tpu.dot_dimension_numbers<[1], [0], [0], [1], [0, 0, 1, 1], [], []>} : vector<8x8xf32>, vector<8x32xf32>, vector<8x32xf32> -> vector<8x32xf32>
    %44 = vector.extract_strided_slice %37 {offsets = [1, 0, 0], sizes = [1, 8, 8], strides = [1, 1, 1]} : vector<4x8x8xf32> to vector<1x8x8xf32>
    %45 = vector.shape_cast %44 : vector<1x8x8xf32> to vector<8x8xf32>
    %46 = vector.extract_strided_slice %38 {offsets = [1, 0, 0], sizes = [1, 8, 32], strides = [1, 1, 1]} : vector<4x8x32xf32> to vector<1x8x32xf32>
    %47 = vector.shape_cast %46 : vector<1x8x32xf32> to vector<8x32xf32>
    %cst_20 = arith.constant dense<0.000000e+00> : vector<8x32xf32>
    %48 = tpu.matmul %45, %47, %cst_20 {dimension_numbers = #tpu.dot_dimension_numbers<[1], [0], [0], [1], [0, 0, 1, 1], [], []>} : vector<8x8xf32>, vector<8x32xf32>, vector<8x32xf32> -> vector<8x32xf32>
    %49 = arith.addf %43, %48 : vector<8x32xf32>
    %50 = vector.extract_strided_slice %37 {offsets = [2, 0, 0], sizes = [1, 8, 8], strides = [1, 1, 1]} : vector<4x8x8xf32> to vector<1x8x8xf32>
    %51 = vector.shape_cast %50 : vector<1x8x8xf32> to vector<8x8xf32>
    %52 = vector.extract_strided_slice %38 {offsets = [2, 0, 0], sizes = [1, 8, 32], strides = [1, 1, 1]} : vector<4x8x32xf32> to vector<1x8x32xf32>
    %53 = vector.shape_cast %52 : vector<1x8x32xf32> to vector<8x32xf32>
    %cst_21 = arith.constant dense<0.000000e+00> : vector<8x32xf32>
    %54 = tpu.matmul %51, %53, %cst_21 {dimension_numbers = #tpu.dot_dimension_numbers<[1], [0], [0], [1], [0, 0, 1, 1], [], []>} : vector<8x8xf32>, vector<8x32xf32>, vector<8x32xf32> -> vector<8x32xf32>
    %55 = arith.addf %49, %54 : vector<8x32xf32>
    %56 = vector.extract_strided_slice %37 {offsets = [3, 0, 0], sizes = [1, 8, 8], strides = [1, 1, 1]} : vector<4x8x8xf32> to vector<1x8x8xf32>
    %57 = vector.shape_cast %56 : vector<1x8x8xf32> to vector<8x8xf32>
    %58 = vector.extract_strided_slice %38 {offsets = [3, 0, 0], sizes = [1, 8, 32], strides = [1, 1, 1]} : vector<4x8x32xf32> to vector<1x8x32xf32>
    %59 = vector.shape_cast %58 : vector<1x8x32xf32> to vector<8x32xf32>
    %cst_22 = arith.constant dense<0.000000e+00> : vector<8x32xf32>
    %60 = tpu.matmul %57, %59, %cst_22 {dimension_numbers = #tpu.dot_dimension_numbers<[1], [0], [0], [1], [0, 0, 1, 1], [], []>} : vector<8x8xf32>, vector<8x32xf32>, vector<8x32xf32> -> vector<8x32xf32>
    %61 = arith.addf %55, %60 : vector<8x32xf32>
    %c0_23 = arith.constant 0 : index
    %c0_24 = arith.constant 0 : index
    %62 = vector.load %arg6[%c0_23, %c0_24] : memref<1x32xf32, #tpu.memory_space<vmem>>, vector<1x32xf32>
    %63 = vector.broadcast %62 : vector<1x32xf32> to vector<8x32xf32>
    %64 = arith.addf %61, %63 : vector<8x32xf32>
    %65 = arith.addf %64, %1 : vector<8x32xf32>
    %c0_25 = arith.constant 0 : index
    %c0_26 = arith.constant 0 : index
    %66 = vector.load %arg7[%c0_25, %c0_26] : memref<1x32xf32, #tpu.memory_space<vmem>>, vector<1x32xf32>
    %c0_27 = arith.constant 0 : index
    %c0_28 = arith.constant 0 : index
    %67 = vector.load %arg8[%c0_27, %c0_28] : memref<1x32xf32, #tpu.memory_space<vmem>>, vector<1x32xf32>
    %cst_29 = arith.constant dense<0.000000e+00> : vector<8xf32>
    %68 = vector.multi_reduction <add>, %65, %cst_29 [1] : vector<8x32xf32> to vector<8xf32>
    %69 = vector.shape_cast %68 : vector<8xf32> to vector<8x1xf32>
    %cst_30 = arith.constant 3.200000e+01 : f32
    %70 = vector.broadcast %cst_30 : f32 to vector<8x1xf32>
    %71 = arith.divf %69, %70 : vector<8x1xf32>
    %72 = arith.mulf %65, %65 : vector<8x32xf32>
    %cst_31 = arith.constant dense<0.000000e+00> : vector<8xf32>
    %73 = vector.multi_reduction <add>, %72, %cst_31 [1] : vector<8x32xf32> to vector<8xf32>
    %74 = vector.shape_cast %73 : vector<8xf32> to vector<8x1xf32>
    %cst_32 = arith.constant 3.200000e+01 : f32
    %75 = vector.broadcast %cst_32 : f32 to vector<8x1xf32>
    %76 = arith.divf %74, %75 : vector<8x1xf32>
    %77 = arith.mulf %71, %71 : vector<8x1xf32>
    %78 = arith.subf %76, %77 : vector<8x1xf32>
    %cst_33 = arith.constant 0.000000e+00 : f32
    %79 = vector.broadcast %cst_33 : f32 to vector<8x1xf32>
    %80 = arith.maximumf %78, %79 : vector<8x1xf32>
    %81 = vector.broadcast %71 : vector<8x1xf32> to vector<8x32xf32>
    %82 = arith.subf %65, %81 : vector<8x32xf32>
    %cst_34 = arith.constant 9.99999974E-6 : f32
    %83 = vector.broadcast %cst_34 : f32 to vector<8x1xf32>
    %84 = arith.addf %80, %83 : vector<8x1xf32>
    %85 = math.rsqrt %84 : vector<8x1xf32>
    %86 = vector.broadcast %85 : vector<8x1xf32> to vector<8x32xf32>
    %87 = arith.mulf %82, %86 : vector<8x32xf32>
    %88 = vector.broadcast %66 : vector<1x32xf32> to vector<8x32xf32>
    %89 = arith.mulf %87, %88 : vector<8x32xf32>
    %90 = vector.broadcast %67 : vector<1x32xf32> to vector<8x32xf32>
    %91 = arith.addf %89, %90 : vector<8x32xf32>
    %c0_35 = arith.constant 0 : index
    %c0_36 = arith.constant 0 : index
    %92 = vector.load %arg9[%c0_35, %c0_36] : memref<32x64xf32, #tpu.memory_space<vmem>>, vector<32x64xf32>
    %cst_37 = arith.constant dense<0.000000e+00> : vector<8x64xf32>
    %93 = tpu.matmul %91, %92, %cst_37 {dimension_numbers = #tpu.dot_dimension_numbers<[1], [0], [0], [1], [0, 0, 1, 1], [], []>} : vector<8x32xf32>, vector<32x64xf32>, vector<8x64xf32> -> vector<8x64xf32>
    %c0_38 = arith.constant 0 : index
    %c0_39 = arith.constant 0 : index
    %94 = vector.load %arg10[%c0_38, %c0_39] : memref<1x64xf32, #tpu.memory_space<vmem>>, vector<1x64xf32>
    %95 = vector.broadcast %94 : vector<1x64xf32> to vector<8x64xf32>
    %96 = arith.addf %93, %95 : vector<8x64xf32>
    %cst_40 = arith.constant 0.000000e+00 : f32
    %97 = vector.broadcast %cst_40 : f32 to vector<8x64xf32>
    %98 = arith.maximumf %96, %97 : vector<8x64xf32>
    %c0_41 = arith.constant 0 : index
    %c0_42 = arith.constant 0 : index
    %99 = vector.load %arg11[%c0_41, %c0_42] : memref<64x32xf32, #tpu.memory_space<vmem>>, vector<64x32xf32>
    %cst_43 = arith.constant dense<0.000000e+00> : vector<8x32xf32>
    %100 = tpu.matmul %98, %99, %cst_43 {dimension_numbers = #tpu.dot_dimension_numbers<[1], [0], [0], [1], [0, 0, 1, 1], [], []>} : vector<8x64xf32>, vector<64x32xf32>, vector<8x32xf32> -> vector<8x32xf32>
    %c0_44 = arith.constant 0 : index
    %c0_45 = arith.constant 0 : index
    %101 = vector.load %arg12[%c0_44, %c0_45] : memref<1x32xf32, #tpu.memory_space<vmem>>, vector<1x32xf32>
    %102 = vector.broadcast %101 : vector<1x32xf32> to vector<8x32xf32>
    %103 = arith.addf %100, %102 : vector<8x32xf32>
    %104 = arith.addf %103, %91 : vector<8x32xf32>
    %c0_46 = arith.constant 0 : index
    %c0_47 = arith.constant 0 : index
    %105 = vector.load %arg13[%c0_46, %c0_47] : memref<1x32xf32, #tpu.memory_space<vmem>>, vector<1x32xf32>
    %c0_48 = arith.constant 0 : index
    %c0_49 = arith.constant 0 : index
    %106 = vector.load %arg14[%c0_48, %c0_49] : memref<1x32xf32, #tpu.memory_space<vmem>>, vector<1x32xf32>
    %cst_50 = arith.constant dense<0.000000e+00> : vector<8xf32>
    %107 = vector.multi_reduction <add>, %104, %cst_50 [1] : vector<8x32xf32> to vector<8xf32>
    %108 = vector.shape_cast %107 : vector<8xf32> to vector<8x1xf32>
    %cst_51 = arith.constant 3.200000e+01 : f32
    %109 = vector.broadcast %cst_51 : f32 to vector<8x1xf32>
    %110 = arith.divf %108, %109 : vector<8x1xf32>
    %111 = arith.mulf %104, %104 : vector<8x32xf32>
    %cst_52 = arith.constant dense<0.000000e+00> : vector<8xf32>
    %112 = vector.multi_reduction <add>, %111, %cst_52 [1] : vector<8x32xf32> to vector<8xf32>
    %113 = vector.shape_cast %112 : vector<8xf32> to vector<8x1xf32>
    %cst_53 = arith.constant 3.200000e+01 : f32
    %114 = vector.broadcast %cst_53 : f32 to vector<8x1xf32>
    %115 = arith.divf %113, %114 : vector<8x1xf32>
    %116 = arith.mulf %110, %110 : vector<8x1xf32>
    %117 = arith.subf %115, %116 : vector<8x1xf32>
    %cst_54 = arith.constant 0.000000e+00 : f32
    %118 = vector.broadcast %cst_54 : f32 to vector<8x1xf32>
    %119 = arith.maximumf %117, %118 : vector<8x1xf32>
    %120 = vector.broadcast %110 : vector<8x1xf32> to vector<8x32xf32>
    %121 = arith.subf %104, %120 : vector<8x32xf32>
    %cst_55 = arith.constant 9.99999974E-6 : f32
    %122 = vector.broadcast %cst_55 : f32 to vector<8x1xf32>
    %123 = arith.addf %119, %122 : vector<8x1xf32>
    %124 = math.rsqrt %123 : vector<8x1xf32>
    %125 = vector.broadcast %124 : vector<8x1xf32> to vector<8x32xf32>
    %126 = arith.mulf %121, %125 : vector<8x32xf32>
    %127 = vector.broadcast %105 : vector<1x32xf32> to vector<8x32xf32>
    %128 = arith.mulf %126, %127 : vector<8x32xf32>
    %129 = vector.broadcast %106 : vector<1x32xf32> to vector<8x32xf32>
    %130 = arith.addf %128, %129 : vector<8x32xf32>
    %131 = vector.shape_cast %130 : vector<8x32xf32> to vector<1x8x32xf32>
    %c0_56 = arith.constant 0 : index
    %c0_57 = arith.constant 0 : index
    %c0_58 = arith.constant 0 : index
    %132 = vector.load %arg15[%c0_56, %c0_57, %c0_58] : memref<1x8x32xf32, #tpu.memory_space<vmem>>, vector<1x8x32xf32>
    tpu.vector_store %arg15[%c0_56, %c0_57, %c0_58], %131 {strides = array<i32>} : memref<1x8x32xf32, #tpu.memory_space<vmem>>, vector<1x8x32xf32>,
    return
  }
  func.func @transform_0(%arg0: i32) -> (i32, i32, i32) {
    %c0_i32 = arith.constant 0 : i32
    %c0_i32_0 = arith.constant 0 : i32
    %c0_i32_1 = arith.constant 0 : i32
    return %arg0, %c0_i32, %c0_i32_0 : i32, i32, i32
  }
  func.func @transform_1(%arg0: i32) -> (i32, i32, i32) {
    %c0_i32 = arith.constant 0 : i32
    %c0_i32_0 = arith.constant 0 : i32
    %c0_i32_1 = arith.constant 0 : i32
    return %arg0, %c0_i32, %c0_i32_0 : i32, i32, i32
  }
  func.func @transform_2(%arg0: i32) -> (i32, i32) {
    %c0_i32 = arith.constant 0 : i32
    %c0_i32_0 = arith.constant 0 : i32
    %c0_i32_1 = arith.constant 0 : i32
    return %c0_i32, %c0_i32_0 : i32, i32
  }
  func.func @transform_3(%arg0: i32) -> (i32, i32) {
    %c0_i32 = arith.constant 0 : i32
    %c0_i32_0 = arith.constant 0 : i32
    %c0_i32_1 = arith.constant 0 : i32
    return %c0_i32, %c0_i32_0 : i32, i32
  }
  func.func @transform_4(%arg0: i32) -> (i32, i32, i32) {
    %c0_i32 = arith.constant 0 : i32
    %c0_i32_0 = arith.constant 0 : i32
    %c0_i32_1 = arith.constant 0 : i32
    %c0_i32_2 = arith.constant 0 : i32
    return %c0_i32, %c0_i32_0, %c0_i32_1 : i32, i32, i32
  }
  func.func @transform_5(%arg0: i32) -> (i32, i32) {
    %c0_i32 = arith.constant 0 : i32
    %c0_i32_0 = arith.constant 0 : i32
    %c0_i32_1 = arith.constant 0 : i32
    return %c0_i32, %c0_i32_0 : i32, i32
  }
  func.func @transform_6(%arg0: i32) -> (i32, i32) {
    %c0_i32 = arith.constant 0 : i32
    %c0_i32_0 = arith.constant 0 : i32
    %c0_i32_1 = arith.constant 0 : i32
    return %c0_i32, %c0_i32_0 : i32, i32
  }
  func.func @transform_7(%arg0: i32) -> (i32, i32) {
    %c0_i32 = arith.constant 0 : i32
    %c0_i32_0 = arith.constant 0 : i32
    %c0_i32_1 = arith.constant 0 : i32
    return %c0_i32, %c0_i32_0 : i32, i32
  }
  func.func @transform_8(%arg0: i32) -> (i32, i32) {
    %c0_i32 = arith.constant 0 : i32
    %c0_i32_0 = arith.constant 0 : i32
    %c0_i32_1 = arith.constant 0 : i32
    return %c0_i32, %c0_i32_0 : i32, i32
  }
  func.func @transform_9(%arg0: i32) -> (i32, i32) {
    %c0_i32 = arith.constant 0 : i32
    %c0_i32_0 = arith.constant 0 : i32
    %c0_i32_1 = arith.constant 0 : i32
    return %c0_i32, %c0_i32_0 : i32, i32
  }
  func.func @transform_10(%arg0: i32) -> (i32, i32) {
    %c0_i32 = arith.constant 0 : i32
    %c0_i32_0 = arith.constant 0 : i32
    %c0_i32_1 = arith.constant 0 : i32
    return %c0_i32, %c0_i32_0 : i32, i32
  }
  func.func @transform_11(%arg0: i32) -> (i32, i32) {
    %c0_i32 = arith.constant 0 : i32
    %c0_i32_0 = arith.constant 0 : i32
    %c0_i32_1 = arith.constant 0 : i32
    return %c0_i32, %c0_i32_0 : i32, i32
  }
  func.func @transform_12(%arg0: i32) -> (i32, i32) {
    %c0_i32 = arith.constant 0 : i32
    %c0_i32_0 = arith.constant 0 : i32
    %c0_i32_1 = arith.constant 0 : i32
    return %c0_i32, %c0_i32_0 : i32, i32
  }
  func.func @transform_13(%arg0: i32) -> (i32, i32) {
    %c0_i32 = arith.constant 0 : i32
    %c0_i32_0 = arith.constant 0 : i32
    %c0_i32_1 = arith.constant 0 : i32
    return %c0_i32, %c0_i32_0 : i32, i32
  }
  func.func @transform_14(%arg0: i32) -> (i32, i32, i32) {
    %c0_i32 = arith.constant 0 : i32
    %c0_i32_0 = arith.constant 0 : i32
    %c0_i32_1 = arith.constant 0 : i32
    return %arg0, %c0_i32, %c0_i32_0 : i32, i32, i32
  }
}

</mosaic_0001>

<bundles_post_ra>
// kernel: tpu_custom_call.1
= control target key start
LH: loop header
LB: loop body
LE: loop exit
PB: predicated region body
PF: predicated region fallthrough
CT: control target
= control target key end

     0   :  { %s1889_s0 = inlined_call_operand.hbm [shape: f32[2,8,32], index: 0, kind: input, shape index: {}]   ;;  %s1890_s1 = inlined_call_operand.hbm [shape: f32[2,1,8], index: 1, kind: input, shape index: {}]   ;;  %s1891_s2 = inlined_call_operand.vmem [shape: f32[32,96], index: 2, kind: input, shape index: {}]   ;;  %s1892_s3 = inlined_call_operand.vmem [shape: f32[1,96], index: 3, kind: input, shape index: {}]   ;;  %s1893_s4 = inlined_call_operand.vmem [shape: f32[4,8,32], index: 4, kind: input, shape index: {}]   ;;  %s1894_s5 = inlined_call_operand.vmem [shape: f32[1,32], index: 5, kind: input, shape index: {}]   ;;  %s1895_s6 = inlined_call_operand.vmem [shape: f32[1,32], index: 6, kind: input, shape index: {}]   ;;  %s1896_s7 = inlined_call_operand.vmem [shape: f32[1,32], index: 7, kind: input, shape index: {}]   ;;  %s1897_s8 = inlined_call_operand.vmem [shape: f32[32,64], index: 8, kind: input, shape index: {}]   ;;  %s1898_s9 = inlined_call_operand.vmem [shape: f32[1,64], index: 9, kind: input, shape index: {}]   ;;  %s1899_s10 = inlined_call_operand.vmem [shape: f32[64,32], index: 10, kind: input, shape index: {}]   ;;  %s1900_s11 = inlined_call_operand.vmem [shape: f32[1,32], index: 11, kind: input, shape index: {}]   ;;  %s1901_s12 = inlined_call_operand.vmem [shape: f32[1,32], index: 12, kind: input, shape index: {}]   ;;  %s1902_s13 = inlined_call_operand.vmem [shape: f32[1,32], index: 13, kind: input, shape index: {}]   ;;  %s1903_s14 = inlined_call_operand.hbm [shape: f32[2,8,32], index: 14, kind: output, shape index: {}]  }
   0x1   :  { %1912 = sst [smem:[#allocation17_spill]] %s1889_s0 }
   0x2   :  { %1913 = sst [smem:[#allocation18_spill]] %s1902_s13 }
   0x3   :  { %1914 = sst [smem:[#allocation19_spill]] %s1903_s14 }
   0x4   :  { %19 = vsyncpa [#allocation3], 0 }
   0x5   :  { %21 = vsyncpa [#allocation3 + $0x1], 0 }
   0x6   :  { %22 = vsyncpa [#allocation6], 0 }
   0x7   :  { %24 = vsyncpa [#allocation6 + $0x1], 0 }
   0x8   :  { %25 = vsyncpa [#allocation4], 0 }
   0x9   :  { %27 = vsyncpa [#allocation4 + $0x1], 0  ;;  %s1570_s29 = smov 0   ;;  %s1572_s30 = smov 0  }
   0xa   :  { %s1574_s15 = smov 0   ;;  %s1576_s16 = smov 0  }
   0xb LB: > { %1915 = sst [smem:[#allocation11_spill]] %s1474_s29  ;;  %s1591_s17 = sadd.s32 4294967295, %s1486_s16   ;;  %s1486_s16 = sphi %s1576_s16, %s1934_s16   ;;  %s1482_s15 = sphi %s1574_s15, %s1936_s15   ;;  %s1478_s30 = sphi %s1572_s30, %s1938_s30   ;;  %s1474_s29 = sphi %s1570_s29, %s1937_s29  }
   0xc   : > { %1916 = sst [smem:[#allocation12_spill]] %s1482_s15  ;;  %s1227_s18 = sadd.s32 4294967294, %s1486_s16  }
   0xd   : > { %s1595_s19 = sadd.s32 1, %s1486_s16   ;;  %s40_s20 = sadd.s32 1, %s1482_s15 }
   0xe   : > { %1917 = sst [smem:[#allocation13_spill]] %s1595_s19  ;;  %s37_s21 = ssub.s32 %s1486_s16, %s1595_s19 }
   0xf   : > { %p47_p0 = scmp.ne.s32.totalorder %s1482_s15, %s1478_s30  ;;  %p38_p1 = scmp.eq.s32.totalorder %s37_s21, 0 }
  0x10   : > { %p48_p2 = scmp.eq.s32.totalorder %s1486_s16, 0  ;;  %p53_p3 = scmp.ne.s32.totalorder %s1478_s30, %s1474_s29 }
  0x11   : > { %p54_p4 = scmp.eq.s32.totalorder %s1591_s17, 0  ;;  %p355_p7 = scmp.eq.s32.totalorder %s1591_s17, 1 }
  0x12   : > { %s1607_s22 = scalar_select %p38_p1, %s1482_s15, %s40_s20  }
  0x13   : > { %p1609_p5 = por %p48_p2, %p47_p0  ;;  %p1613_p6 = por %p54_p4, %p53_p3 }
  0x14   : > { %1918 = sst [smem:[#allocation14_spill]] %s1607_s22  ;;  %p361_p8 = scmp.eq.s32.totalorder %s1227_s18, 1 }
  0x15   : > { %p1275_p10 = scmp.lt.s32.totalorder %s1486_s16, 2  ;;  %p1620_p11 = por %p355_p7, %p47_p0 }
  0x16   : > { %p1624_p12 = por %p361_p8, %p53_p3  ;;  %s1629_s27 = sand.u32 1, %s1482_s15  }
  0x17   : > { %s1921_s25 = scalar_select %p1620_p11, 1, 0 }
  0x18   : > { %s1923_s26 = scalar_select %p1624_p12, 1, 0 }
  0x19   : > { %1922 = sst [smem:[#allocation15_spill]] %s1921_s25  ;;  %s1231_s28 = sshll.u32 %s1486_s16, 3 }
  0x1a   : > { %1924 = sst [smem:[#allocation16_spill]] %s1923_s26  ;;  %s1230_s20 = sshll.u32 %s1629_s27, 3 }
  0x1b   : > { %s1925_s0 = sld [smem:[#allocation17_spill]]  ;;  %s421_s29 = scalar_lea.vmem [#allocation2], %s1230_s20 }
  0x1c   : > { %s429_s13 = sshll.u32 %s421_s29, 4  ;;  %p1638_p13 = pnand %p1275_p10, %p1609_p5  ;;  %s430_s13 = int_to_ptr.vmem [resolvable:$true] %s429_s13 }
  0x1d   : > { %p1232_p0 = scmp.ge.s32.totalorder %s1486_s16, 1  ;;  %p451_p1 = scmp.lt.s32.totalorder %s1486_s16, 3 }
  0x1e   : > { %s418_s15 = scalar_lea.sflag [#allocation3], %s1629_s27  ;;  %p1360_p3 = pneg %p1638_p13 }
  0x21   : > { %s425_s18 = scalar_lea.hbm %s1925_s0, %s1231_s28  ;;  %s1363_s23 = scalar_lea.hbm %s1925_s0, 16 }
  0x22   : > { %s427_s19 = sshll.u32 %s425_s18, 4  ;;  %s428_s19 = int_to_ptr.hbm [resolvable:$true] %s427_s19 }
  0x23   : > { %s1356_s26 = sshra.s32 %s428_s19, 4  ;;  %s1357_s26 = int_to_ptr.hbm [resolvable:$true] %s1356_s26 }
  0x24   : > { %s1358_s14 = scalar_lea.hbm %s1357_s26, 8  ;;  %p1364_p5 = scmp.lt.s32.totalorder %s1357_s26, %s1925_s0 }
  0x25   : > { %p1359_p2 = scmp.ne.s32.totalorder %s1357_s26, %s1358_s14  ;;  %p1365_p8 = scmp.lt.s32.totalorder %s1363_s23, %s1358_s14 }
  0x27   : > { %p1361_p4 = pnand %p1360_p3, %p1359_p2  ;;  %p1366_p10 = por %p1365_p8, %p1364_p5 }
  0x29   : > { %p1362_p7 = pneg %p1361_p4 }
  0x2b   : > { %p1367_p9 = pnand %p1366_p10, %p1362_p7 }
  0x2d   : > { %1370 = shalt.err (!%p1367_p9)
}
  0x2e   : > { %1267 = dma.hbm_to_vmem [thread:$0]  (!%p1638_p13), %s428_s19, 128, %s430_s13, %s418_s15  }
  0x2f   : > { %p1662_p2 = pnand %p1232_p0, %p451_p1  ;;  %s442_s18 = scalar_lea.hbm %s1890_s1, %s1486_s16 }
  0x30   : > { %s444_s29 = sshll.u32 %s442_s18, 4  ;;  %s439_s22 = scalar_lea.vmem [#allocation5], %s1629_s27  ;;  %s445_s29 = int_to_ptr.hbm [resolvable:$true] %s444_s29 }
  0x31   : > { %s446_s23 = sshll.u32 %s439_s22, 4  ;;  %s437_s28 = scalar_lea.sflag [#allocation6], %s1629_s27  ;;  %s447_s23 = int_to_ptr.vmem [resolvable:$true] %s446_s23 }
  0x32   : > { %s1386_s20 = sshra.s32 %s445_s29, 4  ;;  %s1393_s19 = scalar_lea.hbm %s1890_s1, 2  ;;  %s1387_s20 = int_to_ptr.hbm [resolvable:$true] %s1386_s20 }
  0x33   : > { %s1388_s0 = scalar_lea.hbm %s1387_s20, 1  ;;  %p1394_p4 = scmp.lt.s32.totalorder %s1387_s20, %s1890_s1 }
  0x34   : > { %p1389_p9 = scmp.ne.s32.totalorder %s1387_s20, %s1388_s0  ;;  %p1395_p7 = scmp.lt.s32.totalorder %s1393_s19, %s1388_s0 }
  0x36   : > { %p1391_p0 = pnand %p1389_p9, %p1360_p3  ;;  %p1396_p5 = por %p1395_p7, %p1394_p4 }
  0x38   : > { %p1392_p1 = pneg %p1391_p0 }
  0x3a   : > { %p1397_p8 = pnand %p1396_p5, %p1392_p1 }
  0x3c   : > { %1400 = shalt.err (!%p1397_p8)
}
  0x3d   : > { %1270 = dma.hbm_to_vmem [thread:$0]  (!%p1638_p13), %s445_s29, 16, %s447_s23, %s437_s28  }
  0x3e   : > { %455 = sbr.rel (%p1662_p2) target bundleno = 1695 (0x69f), region = 76  ;;  %s1686_s27 = sand.u32 (!%p1662_p2), 1, %s1478_s30  }
  0x3f   : > { %s1233_s18 = sshll.u32 (!%p1662_p2), %s1686_s27, 3  ;;  %s458_s22 = scalar_lea.sflag (!%p1662_p2), [#allocation3], %s1686_s27 }
  0x40   : > { %s461_s0 = scalar_lea.vmem (!%p1662_p2), [#allocation2], %s1233_s18 }
  0x43   : > { %1461 = dma.done.wait (%p1613_p6), %s458_s22, 128  }
  0x44   : > { %1463 = vsyncadd (%p1613_p6), %s458_s22, 4294967168  ;;  %s468_s25 = scalar_lea.sflag [#allocation6], %s1686_s27  ;;  %s470_s21 = scalar_lea.vmem [#allocation5], %s1686_s27 }
  0x45   : > { %1465 = dma.done.wait (%p1613_p6), %s468_s25, 16  }
  0x46   : > { %1467 = vsyncadd (%p1613_p6), %s468_s25, 4294967280  ;;  %v527_v0 = vld [vmem:[%s1891_s2 + $0x18] sm:$0xff]  ;;  %v526_v1 = vld [vmem:[%s1891_s2 + $0x10] sm:$0xff]  ;;  %vm532_vm0 = vcmask 261120   ;;  %s1488_s22 = smov 120   ;;  %s1489_s25 = smov 56  }
  0x47   : > { %548 = vmatpush.msra.mxu0 %v527_v0  ;;  %v525_v2 = vld [vmem:[%s1891_s2 + $0x8] sm:$0xff]  ;;  %v524_v3 = vld [vmem:[%s1891_s2] sm:$0xff]  ;;  %s1491_s29 = smov 80   ;;  %vm568_vm1 = vcmask 64512   ;;  %v1492_v13 = vmov 0.0   ;;  %s1255_s23 = sshll.u32 %s1591_s17, 3 }
  0x48   : > { %v1714_v4 = vld [vmem:[%s461_s0] sm:$0xff]  ;;  %s1490_s0 = smov 104   ;;  %s1928_s19 = sld [smem:[#allocation19_spill]] }
  0x49   : > { %549 = vmatpush.msra.mxu0 %v526_v1  ;;  %v1326_v5 = vld [vmem:[%s1892_s3] ss:$0 sm:$0xff]  ;;  %s519_s17 = scalar_lea.vmem [#allocation7], %s1233_s18 }
  0x4a   : > { %v521_v12 = vld [vmem:[%s470_s21] sm:$0x1]  ;;  %s1493_s21 = smov 112  }
  0x4b   : > { %550 = vmatpush.msra.mxu0 %v525_v2  ;;  %vm522_vm2 = vcmp.eq.f32.partialorder %v521_v12, 0.0 }
  0x4c   : > { %v523_v14 = vsel %vm522_vm2, -1e+10, %v1492_v13 }
  0x4d   : > { %551 = vmatpush.msra.mxu0 %v524_v3  ;;  %v564_v16 = vperm.slane %v523_v14, 0 }
  0x4e   : > { %1235 = vmatmul.msk.f32.vlgmr.msra.gmra.mxu0 %vm532_vm0, %v1714_v4  ;;  %s1133_s26 = scalar_lea.hbm %s1928_s19, %s1255_s23  ;;  %s1436_s18 = scalar_lea.hbm %s1928_s19, 16 }
  0xcb   : > { %v553_v6 = vpop.f32.mrf.mxu0 }
  0xcc   : > { %v1721_v7 = vadd.f32 %v1326_v5, %v553_v6 }
  0xce   : > { %566 = vrot.lane.b32.xlu2 %v1721_v7, %s1488_s22  ;;  %561 = vrot.lane.b32.xlu1 %v1721_v7, %s1489_s25  ;;  %s1930_s25 = sld [smem:[#allocation18_spill]] }
  0xcf   : > { %557 = vrot.lane.b32.xlu0 %v1721_v7, %s1490_s0  ;;  %s1135_s0 = sshll.u32 %s519_s17, 4  ;;  %s1136_s0 = int_to_ptr.vmem [resolvable:$true] %s1135_s0 }
  0xd7   : > { %559 = vrot.lane.b32.xlu0 %v1721_v7, %s1491_s29  ;;  %s1137_s29 = sshll.u32 %s1133_s26, 4  ;;  %s1138_s29 = int_to_ptr.hbm [resolvable:$true] %s1137_s29 }
  0xd8   : > { %s1430_s28 = sshra.s32 %s1138_s29, 4  ;;  %s1431_s28 = int_to_ptr.hbm [resolvable:$true] %s1430_s28 }
  0xd9   : > { %s1432_s23 = scalar_lea.hbm %s1431_s28, 8  ;;  %p1437_p10 = scmp.lt.s32.totalorder %s1431_s28, %s1928_s19 }
  0xda   : > { %p1433_p6 = scmp.ne.s32.totalorder %s1431_s28, %s1432_s23  ;;  %p1438_p2 = scmp.lt.s32.totalorder %s1436_s18, %s1432_s23 }
  0xdc   : > { %p1434_p13 = pnand %p1433_p6, %p1620_p11  ;;  %p1439_p9 = por %p1438_p2, %p1437_p10 }
  0xde   : > { %p1435_p3 = pneg %p1434_p13 }
  0xe0   : > { %p1440_p0 = pnand %p1439_p9, %p1435_p3 }
 0x128   : > { %v567_v8 = vpop.permute.xlu2 %566 }
 0x129   : > { %1236 = vmatpush.xpose.msk.msra.mxu1 %vm568_vm1, %v567_v8 }
 0x12c   : > { %1237 = vmatmul.msk.f32.vlgmr.msra.gmra.mxu1 %vm568_vm1, %v1721_v7 }
 0x140   : > { %v562_v9 = vpop.permute.xlu1 %561 }
 0x141   : > { %v1730_v10 = vpop.permute.xlu0 %557  ;;  %645 = vrot.lane.b32.xlu0 %v562_v9, %s1488_s22 }
 0x142   : > { %593 = vrot.lane.b32.xlu1 %v1730_v10, %s1488_s22  ;;  %v1316_v52 = vpack.i.bf16 %v1730_v10, %v1721_v7 }
 0x149   : > { %v560_v11 = vpop.permute.xlu0 %559 }
 0x14a   : > { %619 = vrot.lane.b32.xlu2 %v560_v11, %s1488_s22  ;;  %v1321_v45 = vpack.i.bf16 %v562_v9, %v560_v11 }
 0x1a4   : > { %v620_v15 = vpop.permute.xlu2 %619 }
 0x1a5   : > { %1240 = vmatpush.xpose.msk.msrb.mxu0 %vm568_vm1, %v620_v15 }
 0x1a8   : > { %1241 = vmatmul.msk.f32.vlgmr.msrb.gmra.mxu0 %vm568_vm1, %v560_v11 }
 0x1a9   : > { %v590_v17 = vpop.f32.mrf.mxu1 }
 0x1aa   : > { %v591_v18 = vadd.f32 %v590_v17, %v564_v16 }
 0x1ac   : > { %v671_v19 = vsel %vm568_vm1, %v591_v18, -inf }
 0x1ad   : > { %672 = vmax.xlane.f32.xlu1 %v671_v19 }
 0x1b3   : > { %v646_v20 = vpop.permute.xlu0 %645 }
 0x1b4   : > { %v594_v21 = vpop.permute.xlu1 %593  ;;  %1242 = vmatpush.xpose.msk.msrb.mxu1 %vm568_vm1, %v646_v20 }
 0x1b5   : > { %1238 = vmatpush.xpose.msk.msra.mxu2 %vm568_vm1, %v594_v21 }
 0x1b7   : > { %1243 = vmatmul.msk.f32.vlgmr.msrb.gmra.mxu1 %vm568_vm1, %v562_v9 }
 0x1b8   : > { %1239 = vmatmul.msk.f32.vlgmr.msra.gmra.mxu2 %vm568_vm1, %v1730_v10 }
 0x220   : > { %v673_v22 = vpop.xlane.xlu1 %672 }
 0x221   : > { %v683_v23 = vsub.f32 %v591_v18, %v673_v22 }
 0x223   : > { %v687_v24 = vmul.f32 1.442695, %v683_v23 }
 0x225   : > { %1334 = vpow2.f32 %v687_v24  ;;  %v642_v25 = vpop.f32.mrf.mxu0 }
 0x226   : > { %v643_v26 = vadd.f32 %v642_v25, %v564_v16 }
 0x228   : > { %v677_v27 = vsel %vm568_vm1, %v643_v26, -inf }
 0x229   : > { %678 = vmax.xlane.f32.xlu0 %v677_v27 }
 0x22b   : > { %v1744_v28 = vpop.eup %1334 }
 0x22c   : > { %v695_v29 = vsel %vm568_vm1, %v1744_v28, 0.0 }
 0x22d   : > { %696 = vadd.xlane.f32.xlu1 %v695_v29 }
 0x234   : > { %v668_v33 = vpop.f32.mrf.mxu1 }
 0x235   : > { %v669_v34 = vadd.f32 %v668_v33, %v564_v16 }
 0x237   : > { %v680_v35 = vsel %vm568_vm1, %v669_v34, -inf }
 0x23b   : > { %v616_v30 = vpop.f32.mrf.mxu2 }
 0x23c   : > { %v617_v31 = vadd.f32 %v616_v30, %v564_v16 }
 0x23e   : > { %v674_v32 = vsel %vm568_vm1, %v617_v31, -inf }
 0x23f   : > { %675 = vmax.xlane.f32.xlu2 %v674_v32 }
 0x247   : > { %681 = vmax.xlane.f32.xlu2 %v680_v35 }
 0x29c   : > { %v679_v36 = vpop.xlane.xlu0 %678 }
 0x29d   : > { %v685_v37 = vsub.f32 %v643_v26, %v679_v36 }
 0x29f   : > { %v691_v38 = vmul.f32 1.442695, %v685_v37 }
 0x2a0   : > { %v697_v53 = vpop.xlane.xlu1 %696 }
 0x2a1   : > { %1336 = vpow2.f32 %v691_v38  ;;  %v718_v12 = vand.u32 2147483648, %v697_v53  ;;  %vm712_vm8 = vweird.f32 %v697_v53  ;;  %v716_v13 = vand.u32 2147483647, %v697_v53 }
 0x2a3   : > { %v719_v15 = vor.u32 1.1754944e-38, %v718_v12  ;;  %vm717_vm10 = vcmp.eq.f32.partialorder %v716_v13, 8.507059e+37  ;;  %v1017_v13 = vld [vmem:[%s1897_s8] sm:$0xff] }
 0x2a7   : > { %v1337_v39 = vpop.eup %1336 }
 0x2a8   : > { %v701_v40 = vsel %vm568_vm1, %v1337_v39, 0.0 }
 0x2a9   : > { %702 = vadd.xlane.f32.xlu0 %v701_v40 }
 0x2b2   : > { %v676_v41 = vpop.xlane.xlu2 %675 }
 0x2b3   : > { %v684_v42 = vsub.f32 %v617_v31, %v676_v41 }
 0x2b5   : > { %v689_v43 = vmul.f32 1.442695, %v684_v42 }
 0x2b7   : > { %1338 = vpow2.f32 %v689_v43 }
 0x2ba   : > { %v682_v44 = vpop.xlane.xlu2 %681 }
 0x2bb   : > { %v686_v46 = vsub.f32 %v669_v34, %v682_v44  ;;  %v873_v44 = vld [vmem:[%s1893_s4 + $0x10] sm:$0xff] }
 0x2bd   : > { %v1751_v47 = vpop.eup %1338  ;;  %v693_v48 = vmul.f32 1.442695, %v686_v46  ;;  %1322 = vrot.lane.b32.xlu0 %v1321_v45, %s1493_s21  ;;  %v871_v45 = vld [vmem:[%s1893_s4] sm:$0xff]  ;;  %v872_v46 = vld [vmem:[%s1893_s4 + $0x8] sm:$0xff] }
 0x2be   : > { %v698_v49 = vsel %vm568_vm1, %v1751_v47, 0.0 }
 0x2bf   : > { %1340 = vpow2.f32 %v693_v48  ;;  %699 = vadd.xlane.f32.xlu2 %v698_v49 }
 0x2c5   : > { %v1755_v50 = vpop.eup %1340 }
 0x2c6   : > { %v704_v51 = vsel %vm568_vm1, %v1755_v50, 0.0 }
 0x2c7   : > { %705 = vadd.xlane.f32.xlu1 %v704_v51 }
 0x2d7   : > { %1317 = vrot.lane.b32.xlu2 %v1316_v52, %s1493_s21  ;;  %s1123_s21 = scalar_lea.sflag [#allocation4], %s1686_s27 }
 0x31c   : > { %v703_v54 = vpop.xlane.xlu0 %702 }
 0x31d   : > { %1342 = vrcp.f32 %v703_v54  ;;  %v748_v61 = vand.u32 2147483648, %v703_v54  ;;  %v746_v62 = vand.u32 2147483647, %v703_v54  ;;  %vm742_vm4 = vweird.f32 %v703_v54 }
 0x31e   : > { %1344 = vrcp.f32 %v697_v53 }
 0x31f   : > { %v749_v2 = vor.u32 1.1754944e-38, %v748_v61  ;;  %vm747_vm6 = vcmp.eq.f32.partialorder %v746_v62, 8.507059e+37 }
 0x323   : > { %v1343_v55 = vpop.eup %1342 }
 0x324   : > { %v1345_v56 = vpop.eup %1344  ;;  %v738_v57 = vmul.f32 %v1343_v55, %v703_v54  ;;  %vm743_vm3 = vweird.f32 %v1343_v55 }
 0x325   : > { %v708_v59 = vmul.f32 %v1345_v56, %v697_v53  ;;  %vm744_vm5 = vmor %vm742_vm4, %vm743_vm3  ;;  %vm713_vm7 = vweird.f32 %v1345_v56 }
 0x326   : > { %v739_v58 = vsub.f32 1.0, %v738_v57  ;;  %vm714_vm9 = vmor %vm712_vm8, %vm713_vm7  ;;  %v1327_v57 = vld [vmem:[%s1894_s5] ss:$0 sm:$0xff]  ;;  %vm1061_vm8 = vcmask 523264  }
 0x327   : > { %v709_v0 = vsub.f32 1.0, %v708_v59 }
 0x328   : > { %v740_v60 = vmul.f32 %v1343_v55, %v739_v58 }
 0x329   : > { %v710_v5 = vmul.f32 %v1345_v56, %v709_v0 }
 0x32a   : > { %v741_v63 = vadd.f32 %v1343_v55, %v740_v60 }
 0x32b   : > { %v711_v11 = vadd.f32 %v1345_v56, %v710_v5 }
 0x32c   : > { %v745_v1 = vsel %vm744_vm5, %v1343_v55, %v741_v63 }
 0x32d   : > { %v750_v3 = vsel %vm747_vm6, %v749_v2, %v745_v1  ;;  %v715_v14 = vsel %vm714_vm9, %v1345_v56, %v711_v11  ;;  %v1494_v1 = vmov 32.0   ;;  %v1018_v11 = vld [vmem:[%s1897_s8 + $0x8] sm:$0xff] }
 0x32e   : > { %v751_v9 = vmul.f32 %v1337_v39, %v750_v3  ;;  %v720_v20 = vsel %vm717_vm10, %v719_v15, %v715_v14 }
 0x32f   : > { %v1323_v6 = vpop.permute.xlu0 %1322  ;;  %v721_v25 = vmul.f32 %v1744_v28, %v720_v20  ;;  %v1054_v20 = vld [vmem:[%s1899_s10 + $0x28] sm:$0xff] }
 0x330   : > { %v1325_v7 = vunpack.i.h.bf16 %v1323_v6  ;;  %v1324_v8 = vunpack.i.l.bf16 %v1323_v6 }
 0x332   : > { %840 = vmatpush.msra.mxu0 %v1324_v8  ;;  %866 = vmatpush.msra.mxu1 %v1325_v7  ;;  %v700_v10 = vpop.xlane.xlu2 %699 }
 0x333   : > { %1346 = vrcp.f32 %v700_v10  ;;  %1246 = vmatmul.msk.f32.vlgmr.msra.gmra.mxu0 %vm568_vm1, %v751_v9  ;;  %v733_v24 = vand.u32 2147483648, %v700_v10  ;;  %v731_v27 = vand.u32 2147483647, %v700_v10  ;;  %vm727_vm12 = vweird.f32 %v700_v10 }
 0x334   : > { %939 = vmatpush.msrb.mxu0 %v873_v44 }
 0x335   : > { %v734_v31 = vor.u32 1.1754944e-38, %v733_v24  ;;  %vm732_vm14 = vcmp.eq.f32.partialorder %v731_v27, 8.507059e+37  ;;  %v1052_v24 = vld [vmem:[%s1899_s10 + $0x18] sm:$0xff] }
 0x339   : > { %v1347_v16 = vpop.eup %1346 }
 0x33a   : > { %v723_v17 = vmul.f32 %v1347_v16, %v700_v10  ;;  %v706_v18 = vpop.xlane.xlu1 %705  ;;  %v1318_v19 = vpop.permute.xlu2 %1317  ;;  %vm728_vm11 = vweird.f32 %v1347_v16  ;;  %v1019_v10 = vld [vmem:[%s1897_s8 + $0x10] sm:$0xff] }
 0x33b   : > { %1348 = vrcp.f32 %v706_v18  ;;  %v1319_v22 = vunpack.i.l.bf16 %v1318_v19  ;;  %v1320_v23 = vunpack.i.h.bf16 %v1318_v19  ;;  %vm729_vm13 = vmor %vm727_vm12, %vm728_vm11  ;;  %v763_v28 = vand.u32 2147483648, %v706_v18 }
 0x33c   : > { %v724_v21 = vsub.f32 1.0, %v723_v17  ;;  %v761_v38 = vand.u32 2147483647, %v706_v18  ;;  %vm757_vm2 = vweird.f32 %v706_v18  ;;  %1350 = vrcp.f32 %v1494_v1  ;;  %v1056_v17 = vld [vmem:[%s1899_s10 + $0x38] sm:$0xff] }
 0x33d   : > { %788 = vmatpush.msrb.mxu2 %v1319_v22  ;;  %814 = vmatpush.msra.mxu3 %v1320_v23  ;;  %v764_v40 = vor.u32 1.1754944e-38, %v763_v28  ;;  %v1053_v22 = vld [vmem:[%s1899_s10 + $0x20] sm:$0xff] }
 0x33e   : > { %v725_v26 = vmul.f32 %v1347_v16, %v724_v21  ;;  %1244 = vmatmul.msk.f32.vlgmr.msrb.gmra.mxu2 %vm568_vm1, %v721_v25  ;;  %vm762_vm4 = vcmp.eq.f32.partialorder %v761_v38, 8.507059e+37  ;;  %v1051_v38 = vld [vmem:[%s1899_s10 + $0x10] sm:$0xff] }
 0x33f   : > { %916 = vmatpush.msrb.mxu3 %v871_v45  ;;  %893 = vmatpush.msra.mxu2 %v872_v46  ;;  %v1331_v45 = vld [vmem:[%s1900_s11] ss:$0 sm:$0xff] }
 0x340   : > { %v726_v29 = vadd.f32 %v1347_v16, %v725_v26 }
 0x341   : > { %v1349_v30 = vpop.eup %1348 }
 0x342   : > { %v753_v32 = vmul.f32 %v1349_v30, %v706_v18  ;;  %v730_v33 = vsel %vm729_vm13, %v1347_v16, %v726_v29  ;;  %vm758_vm15 = vweird.f32 %v1349_v30  ;;  %v1351_v2 = vpop.eup %1350  ;;  %v1055_v18 = vld [vmem:[%s1899_s10 + $0x30] sm:$0xff] }
 0x343   : > { %v735_v34 = vsel %vm732_vm14, %v734_v31, %v730_v33  ;;  %vm759_vm3 = vmor %vm757_vm2, %vm758_vm15  ;;  %v981_v3 = vmul.f32 32.0, %v1351_v2  ;;  %v1328_v33 = vld [vmem:[%s1895_s6] ss:$0 sm:$0xff] }
 0x344   : > { %v754_v35 = vsub.f32 1.0, %v753_v32  ;;  %v736_v36 = vmul.f32 %v1751_v47, %v735_v34  ;;  %v874_v47 = vld [vmem:[%s1893_s4 + $0x18] sm:$0xff] }
 0x345   : > { %963 = vmatpush.msrb.mxu1 %v874_v47  ;;  %v982_v5 = vsub.f32 1.0, %v981_v3  ;;  %v1332_v3 = vld [vmem:[%s1901_s12] ss:$0 sm:$0xff] }
 0x346   : > { %v755_v37 = vmul.f32 %v1349_v30, %v754_v35  ;;  %1245 = vmatmul.msk.f32.vlgmr.msra.gmra.mxu3 %vm568_vm1, %v736_v36  ;;  %v1329_v36 = vld [vmem:[%s1896_s7] ss:$0 sm:$0xff] }
 0x347   : > { %v983_v6 = vmul.f32 %v1351_v2, %v982_v5  ;;  %1073 = vmatpush.msra.mxu3 %v1056_v17 }
 0x348   : > { %v756_v39 = vadd.f32 %v1349_v30, %v755_v37 }
 0x349   : > { %v984_v7 = vadd.f32 %v1351_v2, %v983_v6  ;;  %1074 = vmatpush.msra.mxu3 %v1055_v18 }
 0x34a   : > { %v760_v41 = vsel %vm759_vm3, %v1349_v30, %v756_v39  ;;  %v1050_v39 = vld [vmem:[%s1899_s10 + $0x8] sm:$0xff] }
 0x34b   : > { %v765_v42 = vsel %vm762_vm4, %v764_v40, %v760_v41  ;;  %1075 = vmatpush.msra.mxu3 %v1054_v20  ;;  %v1049_v40 = vld [vmem:[%s1899_s10] sm:$0xff] }
 0x34c   : > { %v766_v43 = vmul.f32 %v1755_v50, %v765_v42  ;;  %v1330_v41 = vld [vmem:[%s1898_s9] ss:$0 sm:$0xff] }
 0x34d   : > { %1076 = vmatpush.msra.mxu3 %v1053_v22 }
 0x34e   : > { %1247 = vmatmul.msk.f32.vlgmr.msra.gmra.mxu1 %vm568_vm1, %v766_v43 }
 0x34f   : > { %1077 = vmatpush.msra.mxu3 %v1052_v24 }
 0x351   : > { %1078 = vmatpush.msra.mxu3 %v1051_v38 }
 0x353   : > { %1079 = vmatpush.msra.mxu3 %v1050_v39 }
 0x355   : > { %1080 = vmatpush.msra.mxu3 %v1049_v40 }
 0x3b0   : > { %v842_v48 = vpop.f32.mrf.mxu0 }
 0x3b1   : > { %1250 = vmatmul.msk.f32.vlgmr.msrb.gmra.mxu0 %vm568_vm1, %v842_v48 }
 0x3c1   : > { %v790_v49 = vpop.f32.mrf.mxu2 }
 0x3c2   : > { %1249 = vmatmul.msk.f32.vlgmr.msrb.gmra.mxu3 %vm568_vm1, %v790_v49 }
 0x3c9   : > { %v816_v50 = vpop.f32.mrf.mxu3 }
 0x3ca   : > { %1248 = vmatmul.msk.f32.vlgmr.msra.gmra.mxu2 %vm568_vm1, %v816_v50 }
 0x3cb   : > { %v868_v51 = vpop.f32.mrf.mxu1 }
 0x3cc   : > { %1251 = vmatmul.msk.f32.vlgmr.msrb.gmra.mxu1 %vm568_vm1, %v868_v51  ;;  %vm985_vm1 = vweird.f32 %v1351_v2 }
 0x3cd   : > { %v1790_v9 = vsel %vm985_vm1, %v1351_v2, %v984_v7  ;;  %v1333_v7 = vld [vmem:[%s1930_s25] ss:$0 sm:$0xff] }
 0x42e   : > { %v941_v55 = vpop.f32.mrf.mxu0 }
 0x445   : > { %v918_v52 = vpop.f32.mrf.mxu3 }
 0x449   : > { %v965_v58 = vpop.f32.mrf.mxu1 }
 0x44d   : > { %v895_v53 = vpop.f32.mrf.mxu2 }
 0x44e   : > { %v919_v54 = vadd.f32 %v918_v52, %v895_v53 }
 0x450   : > { %v944_v56 = vadd.f32 %v941_v55, %v919_v54 }
 0x452   : > { %v968_v59 = vadd.f32 %v965_v58, %v944_v56 }
 0x454   : > { %v973_v60 = vadd.f32 %v1327_v57, %v968_v59 }
 0x456   : > { %v974_v61 = vadd.f32 %v973_v60, %v1714_v4  ;;  %v1020_v4 = vld [vmem:[%s1897_s8 + $0x18] sm:$0xff] }
 0x457   : > { %1040 = vmatpush.msrb.mxu2 %v1020_v4 }
 0x458   : > { %v977_v62 = vsel %vm532_vm0, %v974_v61, 0.0  ;;  %v988_v63 = vmul.f32 %v974_v61, %v974_v61 }
 0x459   : > { %978 = vadd.xlane.f32.xlu1 %v977_v62  ;;  %1041 = vmatpush.msrb.mxu2 %v1019_v10 }
 0x45a   : > { %v989_v0 = vsel %vm532_vm0, %v988_v63, 0.0 }
 0x45b   : > { %1042 = vmatpush.msrb.mxu2 %v1018_v11 }
 0x45d   : > { %1043 = vmatpush.msrb.mxu2 %v1017_v13 }
 0x461   : > { %990 = vadd.xlane.f32.xlu1 %v989_v0 }
 0x4cc   : > { %v979_v8 = vpop.xlane.xlu1 %978 }
 0x4cd   : > { %v987_v12 = vmul.f32 %v1790_v9, %v979_v8 }
 0x4cf   : > { %v993_v15 = vmul.f32 %v987_v12, %v987_v12  ;;  %v996_v32 = vsub.f32 %v974_v61, %v987_v12 }
 0x4d4   : > { %v991_v14 = vpop.xlane.xlu1 %990 }
 0x4d5   : > { %v992_v16 = vmul.f32 %v991_v14, %v1790_v9 }
 0x4d7   : > { %v994_v19 = vsub.f32 %v992_v16, %v993_v15 }
 0x4d9   : > { %v995_v21 = vmax.f32 %v994_v19, 0.0 }
 0x4db   : > { %v997_v23 = vadd.f32 1e-05, %v995_v21 }
 0x4dd   : > { %1352 = vrsqrt.f32 %v997_v23  ;;  %vm1004_vm6 = vweird.f32 %v997_v23 }
 0x4e3   : > { %v1353_v25 = vpop.eup %1352 }
 0x4e4   : > { %v999_v26 = vmul.f32 %v1353_v25, %v997_v23  ;;  %vm1005_vm5 = vweird.f32 %v1353_v25 }
 0x4e5   : > { %vm1006_vm7 = vmor %vm1004_vm6, %vm1005_vm5 }
 0x4e6   : > { %v1000_v27 = vmul.f32 %v1353_v25, %v999_v26 }
 0x4e8   : > { %v1001_v29 = vmul.f32 0.5, %v1000_v27 }
 0x4ea   : > { %v1002_v30 = vsub.f32 1.5, %v1001_v29 }
 0x4ec   : > { %v1003_v31 = vmul.f32 %v1353_v25, %v1002_v30 }
 0x4ee   : > { %v1007_v34 = vsel %vm1006_vm7, %v1353_v25, %v1003_v31 }
 0x4ef   : > { %v1008_v35 = vmul.f32 %v1007_v34, %v996_v32 }
 0x4f1   : > { %v1012_v28 = vmul.f32 %v1328_v33, %v1008_v35 }
 0x4f3   : > { %v1016_v37 = vadd.f32 %v1329_v36, %v1012_v28 }
 0x4f5   : > { %1252 = vmatmul.msk.f32.vlgmr.msrb.gmra.mxu2 %vm532_vm0, %v1016_v37 }
 0x578   : > { %v1045_v42 = vpop.f32.mrf.mxu2 }
 0x579   : > { %v1046_v43 = vadd.f32 %v1330_v41, %v1045_v42 }
 0x57b   : > { %v1048_v44 = vmax.f32 %v1046_v43, 0.0 }
 0x57d   : > { %1253 = vmatmul.msk.f32.vlgmr.msra.gmra.mxu3 %vm1061_vm8, %v1048_v44 }
 0x600   : > { %v1082_v46 = vpop.f32.mrf.mxu3 }
 0x601   : > { %v1083_v47 = vadd.f32 %v1331_v45, %v1082_v46 }
 0x603   : > { %v1085_v48 = vadd.f32 %v1083_v47, %v1016_v37 }
 0x605   : > { %v1088_v49 = vsel %vm532_vm0, %v1085_v48, 0.0  ;;  %v1092_v50 = vmul.f32 %v1085_v48, %v1085_v48 }
 0x606   : > { %1089 = vadd.xlane.f32.xlu1 %v1088_v49 }
 0x607   : > { %v1093_v51 = vsel %vm532_vm0, %v1092_v50, 0.0 }
 0x608   : > { %1094 = vadd.xlane.f32.xlu0 %v1093_v51 }
 0x679   : > { %v1090_v52 = vpop.xlane.xlu1 %1089 }
 0x67a   : > { %v1091_v53 = vmul.f32 %v1090_v52, %v1790_v9 }
 0x67b   : > { %v1095_v54 = vpop.xlane.xlu0 %1094 }
 0x67c   : > { %v1097_v55 = vmul.f32 %v1091_v53, %v1091_v53  ;;  %v1096_v56 = vmul.f32 %v1095_v54, %v1790_v9  ;;  %v1100_v2 = vsub.f32 %v1085_v48, %v1091_v53 }
 0x67e   : > { %v1098_v57 = vsub.f32 %v1096_v56, %v1097_v55 }
 0x680   : > { %v1099_v58 = vmax.f32 %v1098_v57, 0.0 }
 0x682   : > { %v1101_v59 = vadd.f32 1e-05, %v1099_v58 }
 0x684   : > { %1354 = vrsqrt.f32 %v1101_v59  ;;  %vm1108_vm10 = vweird.f32 %v1101_v59 }
 0x68a   : > { %v1355_v60 = vpop.eup %1354 }
 0x68b   : > { %v1103_v61 = vmul.f32 %v1355_v60, %v1101_v59  ;;  %vm1109_vm9 = vweird.f32 %v1355_v60 }
 0x68c   : > { %vm1110_vm11 = vmor %vm1108_vm10, %vm1109_vm9 }
 0x68d   : > { %v1104_v62 = vmul.f32 %v1355_v60, %v1103_v61 }
 0x68f   : > { %v1105_v63 = vmul.f32 0.5, %v1104_v62 }
 0x691   : > { %v1106_v0 = vsub.f32 1.5, %v1105_v63 }
 0x693   : > { %v1107_v1 = vmul.f32 %v1355_v60, %v1106_v0 }
 0x695   : > { %v1111_v5 = vsel %vm1110_vm11, %v1355_v60, %v1107_v1 }
 0x696   : > { %v1112_v6 = vmul.f32 %v1111_v5, %v1100_v2 }
 0x698   : > { %v1116_v8 = vmul.f32 %v1332_v3, %v1112_v6 }
 0x69a   : > { %v1120_v9 = vadd.f32 %v1333_v7, %v1116_v8 }
 0x69c   : > { %1121 = vst.msk [vmem:[%s519_s17] sm:$0xff] %vm532_vm0, %v1120_v9 }
 0x69d   : > { %1443 = shalt.err (!%p1440_p0)
}
 0x69e   : > { %1262 = dma.vmem_to_hbm [thread:$0]  (%p1620_p11), %s1136_s0, 128, %s1138_s29, %s1123_s21  }
 0x69f PF: > { %s1931_s27 = sld [smem:[#allocation11_spill]]  ;;  %p1933_p1 = scmp.ge.s32.totalorder %s1486_s16, 2 }
 0x6a1   : > { %p1272_p4 = pnand %p1933_p1, %p1624_p12 }
 0x6a3   : > { %p1273_p7 = pneg %p1272_p4 }
 0x6a5   : > { %s1149_s22 = sand.u32 1, %s1931_s27  }
 0x6a6   : > { %s1150_s25 = scalar_lea.sflag [#allocation4], %s1149_s22 }
 0x6a7   : > { %1469 = dma.done.wait (%p1273_p7), %s1150_s25, 128  }
 0x6a8   : > { %1471 = vsyncadd (%p1273_p7), %s1150_s25, 4294967168  ;;  %s1934_s16 = sld [smem:[#allocation13_spill]]  ;;  %s1937_s29 = smov %s1478_s30 }
 0x6a9   : > { %s1935_s17 = sld [smem:[#allocation12_spill]] }
 0x6aa   : > { %s1936_s15 = sld [smem:[#allocation14_spill]] }
 0x6ae   : > { %p30_p5 = scmp.ge.s32.totalorder %s1934_s16, 4  }
 0x6af   : > { %s1938_s30 = smov %s1935_s17 }
 0x6b0   :  { %32 = sbr.rel (!%p30_p5) target bundleno = 11 (0xb), region = 134 }
 0x6b5   :  { %1156 = vsyncpa [#allocation3], 1 }
 0x6b6   :  { %1158 = vsyncpa [#allocation3 + $0x1], 1 }
 0x6b7   :  { %1159 = vsyncpa [#allocation6], 1 }
 0x6b8   :  { %1161 = vsyncpa [#allocation6 + $0x1], 1 }
 0x6b9   :  { %1162 = vsyncpa [#allocation4], 1 }
 0x6ba   :  { %1164 = vsyncpa [#allocation4 + $0x1], 1 }

</bundles_post_ra>
